<compile_context>
chip_gen: v6e
topology: v6e:2x2x1
jax: 0.10.0
libtpu: 0.0.40
codegen_flags: <defaults>
</compile_context>

<pallas_src>
import functools

import jax
import jax.numpy as jnp
from jax.experimental import pallas as pl
from jax.experimental.pallas import tpu as pltpu

_MiB = 1024 * 1024


def _round_up(x, m):
    return ((x + m - 1) // m) * m


def _cdiv(a, b):
    return -(-a // b)


def _device_kind():
    try:
        return jax.devices()[0].device_kind.lower()
    except Exception:
        return ""


def _chip_tuning():
    """Per-generation knobs: (buffer budget, vmem_limit cap, bf16 epilogue, 2-TC)."""
    kind = _device_kind()
    old_gen = any(t in kind for t in ("v2", "v3", "v4", "v5"))
    big_vmem = any(t in kind for t in ("v4", "v5", "v6"))  # 128 MiB physical
    two_tc = ("v7" in kind) or ("7x" in kind)
    if kind and big_vmem:
        budget, cap = 96 * _MiB, 110 * _MiB
    else:
        # v7x (or unknown backend): 64 MiB physical VMEM -> stay well under.
        budget, cap = 44 * _MiB, 56 * _MiB
    return budget, cap, (kind != "" and not old_gen), two_tc


def _pick_tk(h):
    """Lane-aligned divisor of H for the K-tiled fallback."""
    for tk in range(2048, 0, -128):
        if tk <= h and h % tk == 0:
            return tk
    # TODO(synk): H with no lane-aligned divisor; an N-tiled first matmul would
    # bound the W1 slab on v7x for very large H — not needed for these shapes.
    return h


def _head_kernel_resident(x_ref, w1_ref, b1_ref, w2_ref, b2_ref, o_ref, *,
                          tanh_bf16):
    # Grid: (M tiles,).  W1/W2/biases are resident (constant block index).
    #   x_ref : (tm, H)  bf16    w1_ref: (H, H)   bf16
    #   b1_ref: (1, H)   f32     w2_ref: (H, Lp)  bf16
    #   b2_ref: (1, Lp)  f32     o_ref : (tm, Lp) out dtype
    h = jnp.dot(x_ref[...], w1_ref[...], preferred_element_type=jnp.float32)
    h = h + b1_ref[...]
    if tanh_bf16:
        h = jnp.tanh(h.astype(jnp.bfloat16))          # bf16 EUP/VPU (v6e+)
    else:
        h = jnp.tanh(h).astype(w2_ref.dtype)          # f32 EUP (v5e-safe)
    # TODO(synk): dropout omitted (nn.Dropout is identity in eval mode).
    y = jnp.dot(h, w2_ref[...], preferred_element_type=jnp.float32) + b2_ref[...]
    o_ref[...] = y.astype(o_ref.dtype)


def _head_kernel_ktiled(x_ref, w1_ref, b1_ref, w2_ref, b2_ref, o_ref, acc_ref,
                        *, tanh_bf16):
    # Grid: (M tiles, K tiles) — K reduces over H for the first matmul.
    #   x_ref : (tm, tk)  bf16   w1_ref: (tk, H)  bf16
    #   acc_ref: (tm, H)  f32 VMEM accumulator, resident across K.
    k = pl.program_id(1)

    @pl.when(k == 0)
    def _():
        acc_ref[...] = jnp.zeros_like(acc_ref)

    acc_ref[...] += jnp.dot(x_ref[...], w1_ref[...],
                            preferred_element_type=jnp.float32)

    @pl.when(k == pl.num_programs(1) - 1)
    def _():
        h = acc_ref[...] + b1_ref[...]
        if tanh_bf16:
            h = jnp.tanh(h.astype(jnp.bfloat16))
        else:
            h = jnp.tanh(h).astype(w2_ref.dtype)
        y = jnp.dot(h, w2_ref[...],
                    preferred_element_type=jnp.float32) + b2_ref[...]
        o_ref[...] = y.astype(o_ref.dtype)


@functools.partial(jax.jit, static_argnames=("tile_m",))
def classification_head(x, w1, b1, w2, b2, *, tile_m=512):
    """x: (B, S, H); w1: (H, H); b1: (H,); w2: (H, L); b2: (L,)."""
    B, S, H = x.shape
    L = w2.shape[1]
    M = B * S
    out_dtype = x.dtype
    out_bytes = jnp.dtype(out_dtype).itemsize

    budget, vmem_cap, bf16_epilogue, two_tc = _chip_tuning()

    cdt = jnp.bfloat16
    # Only cast when dtypes differ (weights should be stored bf16 already, so
    # no per-call astype HBM pass).
    x2 = x.reshape(M, H)
    if x2.dtype != cdt:
        x2 = x2.astype(cdt)
    w1c = w1 if w1.dtype == cdt else w1.astype(cdt)
    w2c = w2 if w2.dtype == cdt else w2.astype(cdt)
    b1_2d = b1.reshape(1, H).astype(jnp.float32)

    # Lane-dense logits: pad L up to a multiple of 128 (zeros), slice after.
    Lp = max(_round_up(L, 128), 128)
    if Lp != L:
        w2c = jnp.pad(w2c, ((0, 0), (0, Lp - L)))
        b2p = jnp.pad(b2.astype(jnp.float32), (0, Lp - L)).reshape(1, Lp)
    else:
        b2p = b2.astype(jnp.float32).reshape(1, Lp)

    # --- token tile selection -------------------------------------------
    # Multiple of 16 (bf16 packs 16 sublanes/vreg); never (much) bigger than M.
    tm = min(tile_m, _round_up(M, 16))
    tm = _round_up(max(tm, 16), 16)
    if two_tc:
        # Keep >=4 M tiles so both v7x TensorCores get work.
        while M >= 4 * 128 and tm > 128 and _cdiv(M, tm) < 4:
            tm = _round_up(tm // 2, 16)

    bias_bytes = 8 * _round_up(H, 128) * 4 + 8 * Lp * 4

    def resident_bytes(tm_):
        return (2 * tm_ * H * 2          # x tiles (double-buffered bf16)
                + H * H * 2              # W1 resident (single-buffered)
                + H * Lp * 2             # W2 resident (single-buffered)
                + bias_bytes
                + 2 * tm_ * Lp * out_bytes)

    use_resident = resident_bytes(tm) <= budget
    while not use_resident and tm > 128:
        tm = _round_up(tm // 2, 16)
        use_resident = resident_bytes(tm) <= budget

    if use_resident:
        grid = (_cdiv(M, tm),)
        kernel = functools.partial(_head_kernel_resident,
                                   tanh_bf16=bf16_epilogue)
        in_specs = [
            pl.BlockSpec((tm, H), lambda i: (i, 0)),
            pl.BlockSpec((H, H), lambda i: (0, 0),
                         pipeline_mode=pl.Buffered(1)),
            pl.BlockSpec((1, H), lambda i: (0, 0),
                         pipeline_mode=pl.Buffered(1)),
            pl.BlockSpec((H, Lp), lambda i: (0, 0),
                         pipeline_mode=pl.Buffered(1)),
            pl.BlockSpec((1, Lp), lambda i: (0, 0),
                         pipeline_mode=pl.Buffered(1)),
        ]
        out_specs = pl.BlockSpec((tm, Lp), lambda i: (i, 0))
        scratch_shapes = []
        dim_sem = ("parallel",)
        est = resident_bytes(tm)
    else:
        # Very large H: K-tiled first matmul with an f32 VMEM accumulator.
        tk = _pick_tk(H)

        def ktiled_bytes(tm_, tk_):
            return (2 * tm_ * tk_ * 2    # x tiles
                    + 2 * tk_ * H * 2    # W1 K-slabs (double-buffered)
                    + tm_ * H * 4        # f32 accumulator
                    + H * Lp * 2         # W2 resident
                    + bias_bytes
                    + 2 * tm_ * Lp * out_bytes)

        while ktiled_bytes(tm, tk) > budget and tm > 64:
            tm = _round_up(tm // 2, 16)

        grid = (_cdiv(M, tm), H // tk)
        kernel = functools.partial(_head_kernel_ktiled,
                                   tanh_bf16=bf16_epilogue)
        in_specs = [
            pl.BlockSpec((tm, tk), lambda i, k: (i, k)),
            pl.BlockSpec((tk, H), lambda i, k: (k, 0)),
            pl.BlockSpec((1, H), lambda i, k: (0, 0),
                         pipeline_mode=pl.Buffered(1)),
            pl.BlockSpec((H, Lp), lambda i, k: (0, 0),
                         pipeline_mode=pl.Buffered(1)),
            pl.BlockSpec((1, Lp), lambda i, k: (0, 0),
                         pipeline_mode=pl.Buffered(1)),
        ]
        out_specs = pl.BlockSpec((tm, Lp), lambda i, k: (i, 0))
        scratch_shapes = [pltpu.VMEM((tm, H), jnp.float32)]
        dim_sem = ("parallel", "arbitrary")
        est = ktiled_bytes(tm, tk)

    vmem_limit = int(min(vmem_cap, max(32 * _MiB, est + 12 * _MiB)))

    out = pl.pallas_call(
        kernel,
        out_shape=jax.ShapeDtypeStruct((M, Lp), out_dtype),
        grid_spec=pltpu.PrefetchScalarGridSpec(
            num_scalar_prefetch=0,
            grid=grid,
            in_specs=in_specs,
            out_specs=out_specs,
            scratch_shapes=scratch_shapes,
        ),
        compiler_params=pltpu.CompilerParams(
            dimension_semantics=dim_sem,
            vmem_limit_bytes=vmem_limit,
        ),
    )(x2, w1c, b1_2d, w2c, b2p)

    return out[:, :L].reshape(B, S, L)


def reference(x, w1, b1, w2, b2):
    h = jnp.tanh(jnp.einsum("bsh,hk->bsk", x, w1) + b1)
    return jnp.einsum("bsk,kl->bsl", h, w2) + b2


if __name__ == "__main__":
    B, S, H, L = 2, 8, 32, 4   # batch, seq, hidden_size, num_labels

    key = jax.random.PRNGKey(0)
    kx, k1, k2, k3, k4 = jax.random.split(key, 5)

    x = jax.random.normal(kx, (B, S, H), dtype=jnp.float32)

    # Deterministic parameter init (math-friendly (in, out) layout; y = x@W+b).
    w1 = jax.random.normal(k1, (H, H), dtype=jnp.float32) / jnp.sqrt(1.0 * H)
    b1 = jax.random.normal(k2, (H,), dtype=jnp.float32) * 0.01
    w2 = jax.random.normal(k3, (H, L), dtype=jnp.float32) / jnp.sqrt(1.0 * H)
    b2 = jax.random.normal(k4, (L,), dtype=jnp.float32) * 0.01

    # Pre-cast weights to bf16 ONCE (avoids per-call astype HBM passes).
    w1_bf16 = w1.astype(jnp.bfloat16)
    w2_bf16 = w2.astype(jnp.bfloat16)

    out = jax.block_until_ready(
        classification_head(x, w1_bf16, b1, w2_bf16, b2))
    ref = reference(x, w1, b1, w2, b2)
    assert out.shape == (B, S, L), out.shape
    # bf16 operands + f32 accumulation -> loosened tolerance vs pure-f32 ref.
    assert jnp.allclose(out, ref, atol=5e-2, rtol=5e-2), \
        float(jnp.max(jnp.abs(out - ref)))

    # Second check: token count NOT a multiple of the tile — exercises the
    # pad-free partial-last-block path.
    B2, S2 = 3, 50
    xb = jax.random.normal(kx, (B2, S2, H), dtype=jnp.float32)
    out2 = jax.block_until_ready(
        classification_head(xb, w1_bf16, b1, w2_bf16, b2, tile_m=64))
    ref2 = reference(xb, w1, b1, w2, b2)
    assert out2.shape == (B2, S2, L), out2.shape
    assert jnp.allclose(out2, ref2, atol=5e-2, rtol=5e-2), \
        float(jnp.max(jnp.abs(out2 - ref2)))

    print("KERNEL_OK")
</pallas_src>

<mosaic_0001>
module attributes {stable_mosaic.version = 11 : i64} {
  func.func @_head_kernel_resident(%arg0: i32, %arg1: memref<16x32xbf16, #tpu.memory_space<vmem>>, %arg2: memref<32x32xbf16, #tpu.memory_space<vmem>>, %arg3: memref<1x32xf32, #tpu.memory_space<vmem>>, %arg4: memref<32x128xbf16, #tpu.memory_space<vmem>>, %arg5: memref<1x128xf32, #tpu.memory_space<vmem>>, %arg6: memref<16x128xf32, #tpu.memory_space<vmem>>) attributes {dimension_semantics = [#tpu.dimension_semantics<parallel>], iteration_bounds = array<i64: 1>, scalar_prefetch = 0 : i64, scratch_operands = 0 : i64, tpu.core_type = #tpu.core_type<tc>, window_params = [{transform_indices = @transform_0, window_bounds = array<i64: 16, 32>}, {pipeline_mode = #tpu.pipeline_mode<synchronous>, transform_indices = @transform_1, window_bounds = array<i64: 32, 32>}, {pipeline_mode = #tpu.pipeline_mode<synchronous>, transform_indices = @transform_2, window_bounds = array<i64: 1, 32>}, {pipeline_mode = #tpu.pipeline_mode<synchronous>, transform_indices = @transform_3, window_bounds = array<i64: 32, 128>}, {pipeline_mode = #tpu.pipeline_mode<synchronous>, transform_indices = @transform_4, window_bounds = array<i64: 1, 128>}, {transform_indices = @transform_5, window_bounds = array<i64: 16, 128>}]} {
    %c0 = arith.constant 0 : index
    %c0_0 = arith.constant 0 : index
    %0 = vector.load %arg1[%c0, %c0_0] : memref<16x32xbf16, #tpu.memory_space<vmem>>, vector<16x32xbf16>
    %c0_1 = arith.constant 0 : index
    %c0_2 = arith.constant 0 : index
    %1 = vector.load %arg2[%c0_1, %c0_2] : memref<32x32xbf16, #tpu.memory_space<vmem>>, vector<32x32xbf16>
    %cst = arith.constant dense<0.000000e+00> : vector<16x32xf32>
    %2 = tpu.matmul %0, %1, %cst {dimension_numbers = #tpu.dot_dimension_numbers<[1], [0], [0], [1], [0, 0, 1, 1], [], []>} : vector<16x32xbf16>, vector<32x32xbf16>, vector<16x32xf32> -> vector<16x32xf32>
    %c0_3 = arith.constant 0 : index
    %c0_4 = arith.constant 0 : index
    %3 = vector.load %arg3[%c0_3, %c0_4] : memref<1x32xf32, #tpu.memory_space<vmem>>, vector<1x32xf32>
    %4 = vector.broadcast %3 : vector<1x32xf32> to vector<16x32xf32>
    %5 = arith.addf %2, %4 : vector<16x32xf32>
    %6 = arith.truncf %5 : vector<16x32xf32> to vector<16x32xbf16>
    %7 = math.tanh %6 : vector<16x32xbf16>
    %c0_5 = arith.constant 0 : index
    %c0_6 = arith.constant 0 : index
    %8 = vector.load %arg4[%c0_5, %c0_6] : memref<32x128xbf16, #tpu.memory_space<vmem>>, vector<32x128xbf16>
    %cst_7 = arith.constant dense<0.000000e+00> : vector<16x128xf32>
    %9 = tpu.matmul %7, %8, %cst_7 {dimension_numbers = #tpu.dot_dimension_numbers<[1], [0], [0], [1], [0, 0, 1, 1], [], []>} : vector<16x32xbf16>, vector<32x128xbf16>, vector<16x128xf32> -> vector<16x128xf32>
    %c0_8 = arith.constant 0 : index
    %c0_9 = arith.constant 0 : index
    %10 = vector.load %arg5[%c0_8, %c0_9] : memref<1x128xf32, #tpu.memory_space<vmem>>, vector<1x128xf32>
    %11 = vector.broadcast %10 : vector<1x128xf32> to vector<16x128xf32>
    %12 = arith.addf %9, %11 : vector<16x128xf32>
    %c0_10 = arith.constant 0 : index
    %c0_11 = arith.constant 0 : index
    %13 = vector.load %arg6[%c0_10, %c0_11] : memref<16x128xf32, #tpu.memory_space<vmem>>, vector<16x128xf32>
    tpu.vector_store %arg6[%c0_10, %c0_11], %12 {strides = array<i32>} : memref<16x128xf32, #tpu.memory_space<vmem>>, vector<16x128xf32>,
    return
  }
  func.func @transform_0(%arg0: i32) -> (i32, i32) {
    %c0_i32 = arith.constant 0 : i32
    %c0_i32_0 = arith.constant 0 : i32
    return %arg0, %c0_i32 : i32, i32
  }
  func.func @transform_1(%arg0: i32) -> (i32, i32) {
    %c0_i32 = arith.constant 0 : i32
    %c0_i32_0 = arith.constant 0 : i32
    %c0_i32_1 = arith.constant 0 : i32
    return %c0_i32, %c0_i32_0 : i32, i32
  }
  func.func @transform_2(%arg0: i32) -> (i32, i32) {
    %c0_i32 = arith.constant 0 : i32
    %c0_i32_0 = arith.constant 0 : i32
    %c0_i32_1 = arith.constant 0 : i32
    return %c0_i32, %c0_i32_0 : i32, i32
  }
  func.func @transform_3(%arg0: i32) -> (i32, i32) {
    %c0_i32 = arith.constant 0 : i32
    %c0_i32_0 = arith.constant 0 : i32
    %c0_i32_1 = arith.constant 0 : i32
    return %c0_i32, %c0_i32_0 : i32, i32
  }
  func.func @transform_4(%arg0: i32) -> (i32, i32) {
    %c0_i32 = arith.constant 0 : i32
    %c0_i32_0 = arith.constant 0 : i32
    %c0_i32_1 = arith.constant 0 : i32
    return %c0_i32, %c0_i32_0 : i32, i32
  }
  func.func @transform_5(%arg0: i32) -> (i32, i32) {
    %c0_i32 = arith.constant 0 : i32
    %c0_i32_0 = arith.constant 0 : i32
    return %arg0, %c0_i32 : i32, i32
  }
}

</mosaic_0001>

<bundles_post_ra>
// kernel: classification_head.1
= control target key start
LH: loop header
LB: loop body
LE: loop exit
PB: predicated region body
PF: predicated region fallthrough
CT: control target
= control target key end

     0   :  { %v211_v0 = vmov 0.0   ;;  %vm212_vm0 = vmmov 0   ;;  %vm51_vm1 = vcmask 261120   ;;  %s272_s1 = inlined_call_operand.vmem [shape: bf16[32,32], index: 1, kind: input, shape index: {}]   ;;  %s273_s0 = inlined_call_operand.vmem [shape: bf16[16,32], index: 0, kind: input, shape index: {}]   ;;  %s274_s3 = inlined_call_operand.vmem [shape: bf16[32,128], index: 3, kind: input, shape index: {}]   ;;  %s275_s2 = inlined_call_operand.vmem [shape: f32[1,32], index: 2, kind: input, shape index: {}]   ;;  %s276_s4 = inlined_call_operand.vmem [shape: f32[1,128], index: 4, kind: input, shape index: {}]   ;;  %s277_s5 = inlined_call_operand.vmem [shape: f32[16,128], index: 5, kind: output, shape index: {}]  }
   0x1   :  { %186 = vmatprep.subr.bf16.mxu0 %v211_v0  ;;  %v204_v1 = vld [vmem:[%s272_s1 + $0x8] sm:$0xff]   ;;  %190 = vmatprep.mubr.msk.bf16.mxu0 %vm212_vm0, %v211_v0  ;;  %v205_v2 = vld [vmem:[%s272_s1] sm:$0xff]  }
   0x2   :  { %194 = vmatprep.subr.bf16.mxu1 %v211_v0  ;;  %198 = vmatprep.mubr.msk.bf16.mxu1 %vm212_vm0, %v211_v0  ;;  %v206_v3 = vld [vmem:[%s273_s0] sm:$0xff]   ;;  %v207_v4 = vld [vmem:[%s274_s3 + $0x8] sm:$0xff]  }
   0x3   :  { %187 = vmatpush3.bf16.msra.mxu0 %v204_v1  ;;  %195 = vmatpush3.bf16.msra.mxu1 %v207_v4  ;;  %v208_v5 = vld [vmem:[%s274_s3] sm:$0xff]  }
   0x4   :  { %188 = vmatprep.subr.bf16.mxu0 %v211_v0  ;;  %196 = vmatprep.subr.bf16.mxu1 %v211_v0  ;;  %v171_v7 = vld [vmem:[%s275_s2] ss:$0 sm:$0xff] }
   0x5   :  { %v176_v15 = vld [vmem:[%s276_s4] ss:$0 sm:$0xff] }
   0x7   :  { %189 = vmatpush3.bf16.msra.mxu0 %v205_v2  ;;  %197 = vmatpush3.bf16.msra.mxu1 %v208_v5 }
   0xa   :  { %191 = vmatmul.mubr.msk.bf16.vlgmr.msra.gmra.mxu0 %vm51_vm1, %v206_v3 }
  0xca   :  { %v89_v6 = vpop.f32.mrf.mxu0 }
  0xcb   :  { %v90_v10 = vadd.f32 %v171_v7, %v89_v6 }
  0xcc   :  { %v192_v8 = vpop.f32.mrf.mxu0 }
  0xce   :  { %v92_v9 = vpop.f32.mrf.mxu0 }
  0xcf   :  { %v93_v11 = vadd.f32 %v171_v7, %v92_v9 }
  0xd0   :  { %v193_v12 = vpop.f32.mrf.mxu0 }
  0xd1   :  { %v96_v13 = vpack.c.bf16 %v93_v11, %v90_v10 }
  0xd3   :  { %209 = vtanh.bf16 %v96_v13 }
  0xe1   :  { %v210_v14 = vpop.eup %209 }
  0xe2   :  { %199 = vmatmul.mubr.msk.bf16.vlgmr.msra.gmra.mxu1 %vm51_vm1, %v210_v14 }
 0x1a2   :  { %v158_v16 = vpop.f32.mrf.mxu1 }
 0x1a3   :  { %v159_v17 = vadd.f32 %v176_v15, %v158_v16 }
 0x1a4   :  { %v200_v18 = vpop.f32.mrf.mxu1 }
 0x1a5   :  { %165 = vst [vmem:[%s277_s5] sm:$0xff] %v159_v17 }
 0x1a6   :  { %v161_v19 = vpop.f32.mrf.mxu1 }
 0x1a7   :  { %v162_v20 = vadd.f32 %v176_v15, %v161_v19 }
 0x1a8   :  { %v201_v21 = vpop.f32.mrf.mxu1 }
 0x1a9   :  { %166 = vst [vmem:[%s277_s5 + $0x8] sm:$0xff] %v162_v20 }

</bundles_post_ra>
